<compile_context>
chip_gen: v6e
topology: v6e:2x2x1
jax: 0.10.0
libtpu: 0.0.40
codegen_flags: <defaults>
</compile_context>

<pallas_src>
import functools

import jax
import jax.numpy as jnp
from jax.experimental import pallas as pl
from jax.experimental.pallas import tpu as pltpu


def _round_up(x, m):
    return (x + m - 1) // m * m


# ---------------------------------------------------------------------------
# Stage 1: feature transform  XW = X @ W      (row-tiled, bf16 in / bf16 out)
# ---------------------------------------------------------------------------
def xw_kernel(x_ref, w_ref, xw_ref):
    xw_ref[...] = jnp.dot(
        x_ref[...], w_ref[...], preferred_element_type=jnp.float32
    ).astype(xw_ref.dtype)


# ---------------------------------------------------------------------------
# Stage 2: aggregation + epilogue   out_tile = relu(A_tile @ XW + b)
#   A_tile: [TM, N] bf16, XW: [N, Dout_pad] bf16 (resident across grid steps),
#   accumulate f32 on the MXU, bias+ReLU in f32 on the VPU.
# ---------------------------------------------------------------------------
def gcn_agg_kernel(adj_ref, xw_ref, b_ref, o_ref):
    agg = jnp.dot(adj_ref[...], xw_ref[...], preferred_element_type=jnp.float32)
    o_ref[...] = jnp.maximum(agg + b_ref[...], 0.0).astype(o_ref.dtype)


def gcn_forward_pallas(adj_norm, x, w, b):
    """adj_norm: [N,N] f32, x: [N,Din] f32, w: [Din,Dout] f32, b: [1,Dout] f32."""
    n, d_in = x.shape
    d_out = w.shape[1]

    # Lane-dense padded output width; 16-aligned row tile (bf16 sublane packing).
    d_out_pad = _round_up(d_out, 128)
    tm = min(256, _round_up(n, 16))
    n_pad = _round_up(n, tm)

    # Zero-pad (padded rows/cols contribute 0 and are sliced off at the end).
    adj_p = jnp.zeros((n_pad, n_pad), jnp.bfloat16).at[:n, :n].set(
        adj_norm.astype(jnp.bfloat16))
    x_p = jnp.zeros((n_pad, d_in), jnp.bfloat16).at[:n, :].set(
        x.astype(jnp.bfloat16))
    w_p = jnp.zeros((d_in, d_out_pad), jnp.bfloat16).at[:, :d_out].set(
        w.astype(jnp.bfloat16))
    b_p = jnp.zeros((1, d_out_pad), jnp.float32).at[:, :d_out].set(
        b.astype(jnp.float32))

    grid = (n_pad // tm,)
    cparams = pltpu.CompilerParams(
        dimension_semantics=("parallel",),
        vmem_limit_bytes=64 * 1024 * 1024,
    )

    # ---- Stage 1: XW, computed once (hoisted out of the aggregation loop) ----
    xw = pl.pallas_call(
        xw_kernel,
        out_shape=jax.ShapeDtypeStruct((n_pad, d_out_pad), jnp.bfloat16),
        grid=grid,
        in_specs=[
            pl.BlockSpec((tm, d_in), lambda i: (i, 0)),
            pl.BlockSpec((d_in, d_out_pad), lambda i: (0, 0)),
        ],
        out_specs=pl.BlockSpec((tm, d_out_pad), lambda i: (i, 0)),
        compiler_params=cparams,
        cost_estimate=pl.CostEstimate(
            flops=2 * n_pad * d_in * d_out_pad,
            transcendentals=0,
            bytes_accessed=2 * (n_pad * d_in + d_in * d_out_pad + n_pad * d_out_pad),
        ),
    )(x_p, w_p)

    # ---- Stage 2: row-tiled A_tile @ XW + bias + ReLU ----
    # TODO(synk): for graphs too large for a dense [N,N] adjacency (or for XW to
    # stay resident in VMEM), switch to edge-list aggregation with
    # PrefetchScalarGridSpec instead of the dense-normalized-adjacency matmul.
    out_p = pl.pallas_call(
        gcn_agg_kernel,
        out_shape=jax.ShapeDtypeStruct((n_pad, d_out_pad), jnp.float32),
        grid=grid,
        in_specs=[
            pl.BlockSpec((tm, n_pad), lambda i: (i, 0)),          # adjacency row tile
            pl.BlockSpec((n_pad, d_out_pad), lambda i: (0, 0)),   # XW (resident)
            pl.BlockSpec((1, d_out_pad), lambda i: (0, 0)),       # bias (resident)
        ],
        out_specs=pl.BlockSpec((tm, d_out_pad), lambda i: (i, 0)),
        compiler_params=cparams,
        cost_estimate=pl.CostEstimate(
            flops=2 * n_pad * n_pad * d_out_pad,
            transcendentals=0,
            bytes_accessed=(n_pad * n_pad * 2          # adjacency bf16
                            + n_pad * d_out_pad * 2    # XW bf16
                            + n_pad * d_out_pad * 4),  # output f32
        ),
    )(adj_p, xw, b_p)

    return out_p[:n, :d_out]


# ---------------------------------------------------------------------------
# Glue (plain JAX): build the dense symmetrically-normalized adjacency
#   A_hat = D^{-1/2} (A + I) D^{-1/2}
# from edge_index (the scatter/degree bookkeeping GCNConv does).
# NOTE: duplicate edges accumulate weight > 1 (matches PyG only for
# deduplicated edge lists).
# ---------------------------------------------------------------------------
def build_norm_adj(edge_index, num_nodes):
    src = edge_index[0]
    dst = edge_index[1]
    loop = jnp.arange(num_nodes, dtype=edge_index.dtype)
    src = jnp.concatenate([src, loop])
    dst = jnp.concatenate([dst, loop])
    # A[i, j] = 1 if there is an edge j -> i (message from source j to target i)
    a = jnp.zeros((num_nodes, num_nodes), jnp.float32).at[dst, src].add(1.0)
    deg = a.sum(axis=1)  # degree (with self-loops) per target node
    dinv = jnp.where(deg > 0.0, 1.0 / jnp.sqrt(deg), 0.0)
    return a * dinv[:, None] * dinv[None, :]


class GCNWrapperPallas:
    """Mirrors GCNWrapper(in_dim, out_dim, dropout_value=0.0, activation='default')."""

    def __init__(self, in_dim, out_dim, dropout_value=0.0, key=jax.random.PRNGKey(0)):
        kw, _ = jax.random.split(key)
        # Deterministic Glorot-uniform init (GCNConv default) + zero bias.
        limit = (6.0 / (in_dim + out_dim)) ** 0.5
        self.w = jax.random.uniform(kw, (in_dim, out_dim), jnp.float32, -limit, limit)
        self.b = jnp.zeros((1, out_dim), jnp.float32)
        self.dropout_value = dropout_value
        # TODO(synk): training-time dropout masking (dropout_value > 0) not wired in;
        # default dropout_value=0.0 and eval-mode dropout are identity, matching reference.

    def __call__(self, x, edge_index):
        n = x.shape[0]
        adj_norm = build_norm_adj(edge_index, n)
        return gcn_forward_pallas(adj_norm, x.astype(jnp.float32), self.w, self.b)


# ---------------------------------------------------------------------------
# Pure-JAX f32 reference for a sanity check.
# ---------------------------------------------------------------------------
def gcn_reference(adj_norm, x, w, b):
    return jnp.maximum(adj_norm @ (x @ w) + b, 0.0)


if __name__ == "__main__":
    key = jax.random.PRNGKey(0)
    k_x, k_model = jax.random.split(key)

    num_nodes, in_dim, out_dim = 16, 8, 32
    x = jax.random.normal(k_x, (num_nodes, in_dim), jnp.float32)

    # Deterministic edge list: ring graph (both directions).
    idx = jnp.arange(num_nodes, dtype=jnp.int32)
    src = jnp.concatenate([idx, (idx + 1) % num_nodes])
    dst = jnp.concatenate([(idx + 1) % num_nodes, idx])
    edge_index = jnp.stack([src, dst], axis=0)  # [2, E]

    model = GCNWrapperPallas(in_dim, out_dim, dropout_value=0.0, key=k_model)

    out = model(x, edge_index)
    out = jax.block_until_ready(out)

    # Verify against plain-JAX f32 reference (bf16 matmul inputs -> loose tol).
    adj_norm = build_norm_adj(edge_index, num_nodes)
    ref = gcn_reference(adj_norm, x, model.w, model.b)
    assert out.shape == (num_nodes, out_dim)
    assert jnp.allclose(out, ref, atol=5e-2, rtol=5e-2), "mismatch vs reference"

    print("KERNEL_OK")
</pallas_src>

<mosaic_0001>
module attributes {stable_mosaic.version = 11 : i64} {
  func.func @xw_kernel(%arg0: i32, %arg1: memref<16x8xbf16, #tpu.memory_space<vmem>>, %arg2: memref<8x128xbf16, #tpu.memory_space<vmem>>, %arg3: memref<16x128xbf16, #tpu.memory_space<vmem>>) attributes {dimension_semantics = [#tpu.dimension_semantics<parallel>], iteration_bounds = array<i64: 1>, scalar_prefetch = 0 : i64, scratch_operands = 0 : i64, tpu.core_type = #tpu.core_type<tc>, window_params = [{transform_indices = @transform_0, window_bounds = array<i64: 16, 8>}, {pipeline_mode = #tpu.pipeline_mode<synchronous>, transform_indices = @transform_1, window_bounds = array<i64: 8, 128>}, {transform_indices = @transform_2, window_bounds = array<i64: 16, 128>}]} {
    %c0 = arith.constant 0 : index
    %c0_0 = arith.constant 0 : index
    %0 = vector.load %arg1[%c0, %c0_0] : memref<16x8xbf16, #tpu.memory_space<vmem>>, vector<16x8xbf16>
    %c0_1 = arith.constant 0 : index
    %c0_2 = arith.constant 0 : index
    %1 = vector.load %arg2[%c0_1, %c0_2] : memref<8x128xbf16, #tpu.memory_space<vmem>>, vector<8x128xbf16>
    %cst = arith.constant dense<0.000000e+00> : vector<16x128xf32>
    %2 = tpu.matmul %0, %1, %cst {dimension_numbers = #tpu.dot_dimension_numbers<[1], [0], [0], [1], [0, 0, 1, 1], [], []>} : vector<16x8xbf16>, vector<8x128xbf16>, vector<16x128xf32> -> vector<16x128xf32>
    %3 = arith.truncf %2 : vector<16x128xf32> to vector<16x128xbf16>
    %c0_3 = arith.constant 0 : index
    %c0_4 = arith.constant 0 : index
    %4 = vector.load %arg3[%c0_3, %c0_4] : memref<16x128xbf16, #tpu.memory_space<vmem>>, vector<16x128xbf16>
    tpu.vector_store %arg3[%c0_3, %c0_4], %3 {strides = array<i32>} : memref<16x128xbf16, #tpu.memory_space<vmem>>, vector<16x128xbf16>,
    return
  }
  func.func @transform_0(%arg0: i32) -> (i32, i32) {
    %c0_i32 = arith.constant 0 : i32
    %c0_i32_0 = arith.constant 0 : i32
    return %arg0, %c0_i32 : i32, i32
  }
  func.func @transform_1(%arg0: i32) -> (i32, i32) {
    %c0_i32 = arith.constant 0 : i32
    %c0_i32_0 = arith.constant 0 : i32
    %c0_i32_1 = arith.constant 0 : i32
    return %c0_i32, %c0_i32_0 : i32, i32
  }
  func.func @transform_2(%arg0: i32) -> (i32, i32) {
    %c0_i32 = arith.constant 0 : i32
    %c0_i32_0 = arith.constant 0 : i32
    return %arg0, %c0_i32 : i32, i32
  }
}

</mosaic_0001>

<bundles_post_ra>
// kernel: tpu_custom_call.1
= control target key start
LH: loop header
LB: loop body
LE: loop exit
PB: predicated region body
PF: predicated region fallthrough
CT: control target
= control target key end

     0   :  { %vm25_vm0 = vcmask 1043456   ;;  %v143_v1 = vmov 0.0   ;;  %vm144_vm1 = vmmov 0   ;;  %vm21_vm2 = vcmask 64512   ;;  %s172_s0 = inlined_call_operand.vmem [shape: bf16[16,8], index: 0, kind: input, shape index: {}]   ;;  %s173_s1 = inlined_call_operand.vmem [shape: bf16[8,128], index: 1, kind: input, shape index: {}]   ;;  %s174_s2 = inlined_call_operand.hbm [shape: bf16[16,128], index: 2, kind: output, shape index: {}]  }
   0x1   :  { %v15_v0 = vld [vmem:[%s173_s1] sm:$0xf]  ;;  %109 = vmatprep.subr.bf16.mxu0 %v143_v1  ;;  %111 = vmatprep.mubr.msk.bf16.mxu0 %vm144_vm1, %v143_v1 }
   0x2   :  { %v27_v2 = vsel %vm25_vm0, %v15_v0, 0  ;;  %v120_v3 = vld [vmem:[%s172_s0] sm:$0xff]  }
   0x3   :  { %110 = vmatpush3.bf16.msra.mxu0 %v27_v2 }
   0x4   :  { %7 = vsyncpa [#allocation3], 0  ;;  %s145_s13 = smov [#allocation2]  }
   0x5   :  { %s85_s14 = sshll.u32 %s145_s13, 4  ;;  %s86_s14 = int_to_ptr.vmem [resolvable:$true] %s85_s14 }
   0x6   :  { %112 = vmatmul.mubr.msk.bf16.vlgmr.msra.gmra.mxu0 %vm21_vm2, %v120_v3  ;;  %s121_s1 = scalar_lea.vmem %s86_s14, 128  ;;  %p126_p1 = scmp.lt.s32.totalorder %s86_s14, %s86_s14 }
   0x7   :  { %p122_p0 = scmp.ne.s32.totalorder %s86_s14, %s121_s1  ;;  %p127_p2 = scmp.lt.s32.totalorder %s121_s1, %s121_s1 }
   0x9   :  { %p128_p3 = por %p127_p2, %p126_p1 }
   0xb   :  { %p129_p4 = pnand %p128_p3, %p122_p0 }
  0xc6   :  { %v63_v4 = vpop.f32.mrf.mxu0 }
  0xc8   :  { %v113_v5 = vpop.f32.mrf.mxu0 }
  0xca   :  { %v66_v6 = vpop.f32.mrf.mxu0 }
  0xcb   :  { %v105_v7 = vpack.c.bf16 %v66_v6, %v63_v4 }
  0xcc   :  { %v114_v8 = vpop.f32.mrf.mxu0 }
  0xcd   :  { %106 = vst [vmem:[#allocation2] sm:$0xff] %v105_v7  }
  0xce   :  { %132 = shalt.err (!%p129_p4)
}
  0xcf   :  { %s146_s0 = smov 64   ;;  %s147_s15 = smov 4  }
  0xd0   :  { %91 = dma.vmem_to_hbm [thread:$0]  %s86_s14, 128, %s174_s2, [#allocation3], %s146_s0, %s146_s0, %s147_s15  }
  0xd1   :  { %141 = dma.done.wait [#allocation3], 128  }
  0xd2   :  { %142 = vsyncadd [#allocation3], 4294967168 }
  0xd3   :  { %95 = vsyncpa [#allocation3], 1 }

</bundles_post_ra>
